<compile_context>
chip_gen: v7x
topology: tpu7x:2x2x1
jax: 0.10.0
libtpu: 0.0.40
codegen_flags: <defaults>
</compile_context>

<pallas_src>
import functools
import math

import jax
import jax.numpy as jnp
from jax.experimental import pallas as pl
from jax.experimental.pallas import tpu as pltpu


def _attention_kernel(x_ref, q_ref, w_ref, o_ref, *, inv_scale):
    # x_ref: (TB, L, D) block of inputs (native dtype, e.g. bf16 or f32)
    # q_ref: (TB, D)    block of queries
    # w_ref: (D, Hout)  full (pre-transposed) feed-forward weight
    # o_ref: (TB, Hout) output block
    x = x_ref[...]                                   # keep the streamed block in its
    q = q_ref[...].astype(x.dtype)                   # narrow dtype (no f32 copy of x)

    # sim[b, l] = sum_d x[b, l, d] * q[b, d] -- VPU multiply in the input dtype,
    # f32 accumulation on the lane reduce.  Avoids an N=1 MXU matmul.
    sim = jnp.sum(x * q[:, None, :], axis=-1, dtype=jnp.float32)       # (TB, L) f32
    if inv_scale != 1.0:                                               # trace-time branch
        sim = sim * inv_scale

    # Numerically stable softmax over L; denominator reciprocal on the EUP
    # (approx=True -> vrcp in its own VLIW slot).
    m = jnp.max(sim, axis=-1, keepdims=True)
    p = jnp.exp(sim - m)
    att = p * pl.reciprocal(jnp.sum(p, axis=-1, keepdims=True), approx=True)

    # ctx[b, d] = sum_l att[b, l] * x[b, l, d] -- VPU multiply + sublane reduce,
    # f32 accumulation.  Avoids an M=1 MXU matmul.
    # TODO(synk): for large L (block_b*L*D bytes approaching the VMEM budget),
    # tile L with lax.fori_loop(..., unroll=True) / an online softmax instead of
    # materializing the (TB, L, D) broadcast temporaries x*q and att*x.
    ctx = jnp.sum(x * att[:, :, None].astype(x.dtype), axis=1, dtype=jnp.float32)  # (TB, D)

    # Feed-forward on the MXU (weight already transposed to (D, Hout)), then tanh.
    out = jnp.tanh(jnp.dot(ctx, w_ref[...], preferred_element_type=jnp.float32))   # (TB, Hout)

    o_ref[...] = out.astype(o_ref.dtype)


def _round_up(x, m):
    return ((x + m - 1) // m) * m


def _vmem_budget_and_limit():
    """(budget for block sizing, vmem_limit_bytes) from physical VMEM.

    Falls back to the smallest per-TensorCore VMEM of the supported chips
    (v7x: 64 MiB) if the hardware query is unavailable.
    """
    phys = 64 * 1024 * 1024
    try:
        phys = int(getattr(pltpu.get_tpu_info(), "vmem_capacity_bytes", phys))
    except Exception:  # not on TPU / API variation -- stay conservative
        pass
    # Size blocks against ~3/8 of physical (headroom for Mosaic scratch and
    # double-buffering slack); let the compiler use up to ~3/4.
    return (3 * phys) // 8, (3 * phys) // 4


def _choose_block_b(B, L, D, itemsize, vmem_budget_bytes):
    """VMEM-budget-aware batch block size (multiple of 8, or the full batch)."""
    bytes_per_row = max(L * D * itemsize, 1)
    # Live VMEM per grid step ~= 2x (double-buffered) input block plus ~4
    # block-sized f32 temporaries from the broadcast multiplies -> budget / 6.
    cap = vmem_budget_bytes // (6 * bytes_per_row)
    cap = max(8, min((cap // 8) * 8, 1024))      # >= 8 sublanes; >1024 rows ~ no gain
    if B < 16:
        return B            # one small block; block dims equal the full array dims
    # Guarantee >= 2 grid blocks so both v7x TensorCores stream (axis is "parallel").
    return max(8, min(cap, _round_up(pl.cdiv(B, 2), 8)))


def attention_layer_pallas(inputs, query, ff_weight, *, scale, block_b=None):
    """inputs: (B, L, D), query: (B, D), ff_weight: (Hout, D) torch layout.

    Returns (B, Hout) = tanh(softmax(inputs.q / scale) . inputs @ ff_weight.T).
    """
    B, L, D = inputs.shape
    Hout = ff_weight.shape[0]

    # Transpose the weight once outside the kernel: (Hout, D) -> (D, Hout).
    ff_weight_t = ff_weight.T

    vmem_budget, vmem_limit = _vmem_budget_and_limit()
    itemsize = jnp.dtype(inputs.dtype).itemsize
    if block_b is None:
        block_b = _choose_block_b(B, L, D, itemsize, vmem_budget)
    block_b = min(block_b, B)
    if block_b < B:
        # Partial blocks must keep the q/out second-minor dim a multiple of 8.
        block_b = max(8, (block_b // 8) * 8)

    # No jnp.pad of the big activation: the grid is ragged-aware.  The last
    # block may read undefined tail rows (rows are independent) and its OOB
    # output rows are masked on writeback.
    n_blocks = pl.cdiv(B, block_b)

    kernel = functools.partial(_attention_kernel, inv_scale=1.0 / float(scale))

    out = pl.pallas_call(
        kernel,
        out_shape=jax.ShapeDtypeStruct((B, Hout), inputs.dtype),
        grid_spec=pltpu.PrefetchScalarGridSpec(
            num_scalar_prefetch=0,
            grid=(n_blocks,),
            in_specs=[
                # If profiling ever shows exposed DMA at the chosen block_b,
                # add pipeline_mode=pl.Buffered(3) here (needs VMEM headroom).
                pl.BlockSpec((block_b, L, D), lambda b: (b, 0, 0)),
                pl.BlockSpec((block_b, D), lambda b: (b, 0)),
                pl.BlockSpec((D, Hout), lambda b: (0, 0)),   # weight stays resident
            ],
            out_specs=pl.BlockSpec((block_b, Hout), lambda b: (b, 0)),
        ),
        compiler_params=pltpu.CompilerParams(
            dimension_semantics=("parallel",),
            vmem_limit_bytes=vmem_limit,
        ),
    )(inputs, query, ff_weight_t)

    return out


def attention_layer_ref(inputs, query, ff_weight, *, scale):
    sim = jnp.einsum('blh,bh->bl', inputs, query) / scale
    att = jax.nn.softmax(sim, axis=1)
    ctx = jnp.einsum('blh,bl->bh', inputs, att)
    return jnp.tanh(ctx @ ff_weight.T)


if __name__ == "__main__":
    # Module config: input_dim=16 -> feature dim D = 2*input_dim, hidden_dim=32.
    input_dim = 16
    hidden_dim = 32
    D = 2 * input_dim

    key = jax.random.PRNGKey(0)
    k1, k2, k3, k4, k5, k6, k7 = jax.random.split(key, 7)

    # Deterministic parameter init: nn.Linear(input_dim*2, hidden_dim, bias=False)
    bound = 1.0 / math.sqrt(D)
    ff_weight = jax.random.uniform(k5, (hidden_dim, D), dtype=jnp.float32,
                                   minval=-bound, maxval=bound)

    # Tolerance accounts for the EUP approximate reciprocal in the softmax
    # normalization (with approx=False the kernel matches the reference to 1e-5).
    TOL = 2e-3

    # --- Test 1: module defaults (att_type='reg' -> scale=1.0), B=2, L=8 -----
    B, L = 2, 8
    scale = 1.0
    inputs = jax.random.normal(k1, (B, L, D), dtype=jnp.float32)
    query = jax.random.normal(k2, (B, D), dtype=jnp.float32)
    last_hidden = jax.random.normal(k3, (B, hidden_dim), dtype=jnp.float32)  # unused in forward
    rel_words = jax.random.normal(k4, (B, L), dtype=jnp.float32)             # unused in forward

    out = jax.block_until_ready(
        attention_layer_pallas(inputs, query, ff_weight, scale=scale))
    ref = attention_layer_ref(inputs, query, ff_weight, scale=scale)
    assert out.shape == (B, hidden_dim)
    assert jnp.allclose(out, ref, atol=TOL, rtol=TOL), "mismatch vs reference (test 1)"

    # --- Test 2: ragged multi-block grid (B not a multiple of block_b) and
    #             att_type != 'reg' scaling (scale = sqrt(2*input_dim)) --------
    B2, L2 = 20, 8
    scale2 = math.sqrt(2 * input_dim)
    inputs2 = jax.random.normal(k6, (B2, L2, D), dtype=jnp.float32)
    query2 = jax.random.normal(k7, (B2, D), dtype=jnp.float32)

    out2 = jax.block_until_ready(
        attention_layer_pallas(inputs2, query2, ff_weight, scale=scale2))
    ref2 = attention_layer_ref(inputs2, query2, ff_weight, scale=scale2)
    assert out2.shape == (B2, hidden_dim)
    assert jnp.allclose(out2, ref2, atol=TOL, rtol=TOL), "mismatch vs reference (test 2)"

    print("KERNEL_OK")
</pallas_src>

<mosaic_0001>
module attributes {stable_mosaic.version = 11 : i64} {
  func.func @_attention_kernel(%arg0: i32, %arg1: memref<2x8x32xf32, #tpu.memory_space<vmem>>, %arg2: memref<2x32xf32, #tpu.memory_space<vmem>>, %arg3: memref<32x32xf32, #tpu.memory_space<vmem>>, %arg4: memref<2x32xf32, #tpu.memory_space<vmem>>) attributes {dimension_semantics = [#tpu.dimension_semantics<parallel>], iteration_bounds = array<i64: 1>, scalar_prefetch = 0 : i64, scratch_operands = 0 : i64, tpu.core_type = #tpu.core_type<tc>, window_params = [{transform_indices = @transform_0, window_bounds = array<i64: 2, 8, 32>}, {transform_indices = @transform_1, window_bounds = array<i64: 2, 32>}, {pipeline_mode = #tpu.pipeline_mode<synchronous>, transform_indices = @transform_2, window_bounds = array<i64: 32, 32>}, {transform_indices = @transform_3, window_bounds = array<i64: 2, 32>}]} {
    %c0 = arith.constant 0 : index
    %c0_0 = arith.constant 0 : index
    %c0_1 = arith.constant 0 : index
    %0 = vector.load %arg1[%c0, %c0_0, %c0_1] : memref<2x8x32xf32, #tpu.memory_space<vmem>>, vector<2x8x32xf32>
    %c0_2 = arith.constant 0 : index
    %c0_3 = arith.constant 0 : index
    %1 = vector.load %arg2[%c0_2, %c0_3] : memref<2x32xf32, #tpu.memory_space<vmem>>, vector<2x32xf32>
    %2 = vector.shape_cast %1 : vector<2x32xf32> to vector<2x1x32xf32>
    %3 = vector.broadcast %2 : vector<2x1x32xf32> to vector<2x8x32xf32>
    %4 = arith.mulf %0, %3 : vector<2x8x32xf32>
    %cst = arith.constant dense<0.000000e+00> : vector<2x8xf32>
    %5 = vector.multi_reduction <add>, %4, %cst [2] : vector<2x8x32xf32> to vector<2x8xf32>
    %cst_4 = arith.constant dense<0xFF800000> : vector<2xf32>
    %6 = vector.multi_reduction <maximumf>, %5, %cst_4 [1] : vector<2x8xf32> to vector<2xf32>
    %7 = vector.shape_cast %6 : vector<2xf32> to vector<2x1xf32>
    %8 = vector.broadcast %7 : vector<2x1xf32> to vector<2x8xf32>
    %9 = arith.subf %5, %8 : vector<2x8xf32>
    %10 = math.exp %9 : vector<2x8xf32>
    %cst_5 = arith.constant dense<0.000000e+00> : vector<2xf32>
    %11 = vector.multi_reduction <add>, %10, %cst_5 [1] : vector<2x8xf32> to vector<2xf32>
    %12 = vector.shape_cast %11 : vector<2xf32> to vector<2x1xf32>
    %13 = tpu.reciprocal %12 {approx = true} : vector<2x1xf32> -> vector<2x1xf32>
    %14 = vector.broadcast %13 : vector<2x1xf32> to vector<2x8xf32>
    %15 = arith.mulf %10, %14 : vector<2x8xf32>
    %16 = vector.shape_cast %15 : vector<2x8xf32> to vector<2x8x1xf32>
    %17 = vector.broadcast %16 : vector<2x8x1xf32> to vector<2x8x32xf32>
    %18 = arith.mulf %0, %17 : vector<2x8x32xf32>
    %cst_6 = arith.constant dense<0.000000e+00> : vector<2x32xf32>
    %19 = vector.multi_reduction <add>, %18, %cst_6 [1] : vector<2x8x32xf32> to vector<2x32xf32>
    %c0_7 = arith.constant 0 : index
    %c0_8 = arith.constant 0 : index
    %20 = vector.load %arg3[%c0_7, %c0_8] : memref<32x32xf32, #tpu.memory_space<vmem>>, vector<32x32xf32>
    %cst_9 = arith.constant dense<0.000000e+00> : vector<2x32xf32>
    %21 = tpu.matmul %19, %20, %cst_9 {dimension_numbers = #tpu.dot_dimension_numbers<[1], [0], [0], [1], [0, 0, 1, 1], [], []>} : vector<2x32xf32>, vector<32x32xf32>, vector<2x32xf32> -> vector<2x32xf32>
    %22 = math.tanh %21 : vector<2x32xf32>
    %c0_10 = arith.constant 0 : index
    %c0_11 = arith.constant 0 : index
    %23 = vector.load %arg4[%c0_10, %c0_11] : memref<2x32xf32, #tpu.memory_space<vmem>>, vector<2x32xf32>
    tpu.vector_store %arg4[%c0_10, %c0_11], %22 {strides = array<i32>} : memref<2x32xf32, #tpu.memory_space<vmem>>, vector<2x32xf32>,
    return
  }
  func.func @transform_0(%arg0: i32) -> (i32, i32, i32) {
    %c0_i32 = arith.constant 0 : i32
    %c0_i32_0 = arith.constant 0 : i32
    %c0_i32_1 = arith.constant 0 : i32
    return %arg0, %c0_i32, %c0_i32_0 : i32, i32, i32
  }
  func.func @transform_1(%arg0: i32) -> (i32, i32) {
    %c0_i32 = arith.constant 0 : i32
    %c0_i32_0 = arith.constant 0 : i32
    return %arg0, %c0_i32 : i32, i32
  }
  func.func @transform_2(%arg0: i32) -> (i32, i32) {
    %c0_i32 = arith.constant 0 : i32
    %c0_i32_0 = arith.constant 0 : i32
    %c0_i32_1 = arith.constant 0 : i32
    return %c0_i32, %c0_i32_0 : i32, i32
  }
  func.func @transform_3(%arg0: i32) -> (i32, i32) {
    %c0_i32 = arith.constant 0 : i32
    %c0_i32_0 = arith.constant 0 : i32
    return %arg0, %c0_i32 : i32, i32
  }
}

</mosaic_0001>

<bundles_post_ra>
// kernel: tpu_custom_call.1
= control target key start
LH: loop header
LB: loop body
LE: loop exit
PB: predicated region body
PF: predicated region fallthrough
CT: control target
= control target key end

     0   :  { %8 = vsyncpa [#allocation3], 0  ;;  %s486_s0 = inlined_call_operand.hbm [shape: f32[2,8,32], index: 0, kind: input, shape index: {}]   ;;  %s487_s1 = inlined_call_operand.vmem [shape: f32[2,32], index: 1, kind: input, shape index: {}]   ;;  %s488_s2 = inlined_call_operand.hbm [shape: f32[32,32], index: 2, kind: input, shape index: {}]   ;;  %s489_s3 = inlined_call_operand.hbm [shape: f32[2,32], index: 3, kind: output, shape index: {}]  }
   0x1   :  { %9 = vsyncpa [#allocation6], 0 }
   0x2   :  { %10 = vsyncpa [#allocation4], 0  ;;  %s399_s12 = smov [#allocation2]   ;;  %s327_s16 = scalar_lea.hbm %s486_s0, 256 }
   0x3   :  { %s16_s13 = sshll.u32 %s399_s12, 4  ;;  %p328_p0 = scmp.ne.s32.totalorder %s486_s0, %s327_s16  ;;  %s17_s13 = int_to_ptr.vmem [resolvable:$true] %s16_s13 }
   0x4   :  { %p331_p1 = scmp.lt.u32.totalorder %s327_s16, %s486_s0 }
   0x6   :  { %p333_p2 = pnand %p331_p1, %p328_p0 }
   0x8   :  { %336 = shalt.err (!%p333_p2)
}
   0x9   :  { %s337_s21 = scalar_lea.vmem %s17_s13, 256  ;;  %p342_p4 = scmp.lt.s32.totalorder %s17_s13, %s17_s13 }
   0xa   :  { %p338_p3 = scmp.ne.s32.totalorder %s17_s13, %s337_s21  ;;  %p343_p5 = scmp.lt.s32.totalorder %s337_s21, %s337_s21 }
   0xc   :  { %p344_p6 = por %p343_p5, %p342_p4 }
   0xe   :  { %p345_p7 = pnand %p344_p6, %p338_p3 }
  0x10   :  { %348 = shalt.err (!%p345_p7)
}
  0x11   :  { %s400_s22 = smov 128   ;;  %s401_s23 = smov 8  }
  0x12   :  { %22 = dma.hbm_to_vmem [thread:$0]  %s486_s0, 256, %s17_s13, [#allocation3], %s400_s22, %s400_s22, %s401_s23  }
  0x13   :  { %s402_s26 = smov [#allocation5]   ;;  %s349_s30 = scalar_lea.hbm %s488_s2, 512 }
  0x14   :  { %s30_s27 = sshll.u32 %s402_s26, 4  ;;  %p350_p8 = scmp.ne.s32.totalorder %s488_s2, %s349_s30  ;;  %s31_s27 = int_to_ptr.vmem [resolvable:$true] %s30_s27 }
  0x15   :  { %p353_p9 = scmp.lt.u32.totalorder %s349_s30, %s488_s2 }
  0x17   :  { %p355_p10 = pnand %p353_p9, %p350_p8 }
  0x19   :  { %358 = shalt.err (!%p355_p10)
}
  0x1a   :  { %s359_s8 = scalar_lea.vmem %s31_s27, 512  ;;  %p364_p12 = scmp.lt.s32.totalorder %s31_s27, %s31_s27 }
  0x1b   :  { %p360_p11 = scmp.ne.s32.totalorder %s31_s27, %s359_s8  ;;  %p365_p13 = scmp.lt.s32.totalorder %s359_s8, %s359_s8 }
  0x1d   :  { %p366_p0 = por %p365_p13, %p364_p12 }
  0x1f   :  { %p367_p1 = pnand %p366_p0, %p360_p11 }
  0x21   :  { %370 = shalt.err (!%p367_p1)
}
  0x22   :  { %36 = dma.hbm_to_vmem [thread:$0]  %s488_s2, 512, %s31_s27, [#allocation6], %s400_s22, %s400_s22, %s401_s23  }
  0x23   :  { %393 = dma.done.wait [#allocation3], 256  }
  0x24   :  { %394 = vsyncadd [#allocation3], 4294967040 }
  0x25   :  { %395 = dma.done.wait [#allocation6], 512  }
  0x26   :  { %396 = vsyncadd [#allocation6], 4294966784  ;;  %v58_v0 = vlaneseq  ;;  %v403_v1 = vmov 1966171168   ;;  %v456_v12 = vld [vmem:[#allocation2] sm:$0xff]  ;;  %vm81_vm0 = vcmask 261120  }
  0x27   :  { %v56_v2 = vunpack.c.l.s4 %v403_v1  ;;  %v283_v9 = vld.sshfl [vmem:[%s487_s1] sm:$0x11 pattern:$0x75316420]  ;;  %v458_v15 = vld [vmem:[#allocation2 + $0x8] sm:$0xff]  ;;  %vm100_vm1 = vcmask 1041409  }
  0x28   :  { %v59_v3 = vshrl.u32 %v58_v0, 7  ;;  %v91_v4 = vand.u32 127, %v58_v0  ;;  %v54_v10 = vcombine.high %v283_v9, %v283_v9  ;;  %vm103_vm2 = vcmask 58368   ;;  %v185_v50 = vld [vmem:[#allocation5] sm:$0xff]  ;;  %v186_v51 = vld [vmem:[#allocation5 + $0x8] sm:$0xff]  ;;  %v187_v54 = vld [vmem:[#allocation5 + $0x10] sm:$0xff] }
  0x29   :  { %v57_v5 = vunpack.c.0.s8 %v56_v2  ;;  %v404_v27 = vmov 0   ;;  %v302_v52 = vpack.c.bf16 %v186_v51, %v185_v50  ;;  %v405_v53 = vmov 0.0|0.0   ;;  %v188_v55 = vld [vmem:[#allocation5 + $0x18] sm:$0xff]  ;;  %s408_s1 = smov [#allocation7]  }
  0x2a   :  { %v94_v6 = vsub.s32 %v91_v4, %v59_v3  ;;  %v71_v8 = vsub.s32 0, %v59_v3  ;;  %318 = vset.pattern.permute.xlu0 %v404_v27  ;;  %317 = vset.pattern.permute.xlu1 %v404_v27  ;;  %v114_v28 = vsub.s32 1, %v59_v3  ;;  %v305_v56 = vpack.c.bf16 %v188_v55, %v187_v54  ;;  %s273_s2 = sshll.u32 %s408_s1, 4  ;;  %s274_s2 = int_to_ptr.vmem [resolvable:$true] %s273_s2 }
  0x2b   :  { %v60_v7 = vsub.s32 %v57_v5, %v59_v3  ;;  %301 = vmatprep.subr.bf16.mxu0 %v405_v53  ;;  %vm406_vm3 = vmmov 0   ;;  %v407_v57 = vmov 0.0   ;;  %vm265_vm4 = vcmask 254976   ;;  %s371_s12 = scalar_lea.vmem %s274_s2, 32  ;;  %p376_p3 = scmp.lt.s32.totalorder %s274_s2, %s274_s2 }
  0x2c   :  { %303 = vmatpush3.bf16.msra.mxu0 %v302_v52  ;;  %298 = vmatprep.mubr.msk.f32.mxu0 %vm406_vm3, %v407_v57  ;;  %p372_p2 = scmp.ne.s32.totalorder %s274_s2, %s371_s12  ;;  %p377_p4 = scmp.lt.s32.totalorder %s371_s12, %s371_s12 }
  0x2d   :  { %v61_v11 = vrot.slane %v283_v9, %v60_v7  ;;  %v68_v14 = vrot.slane %v54_v10, %v60_v7  ;;  %304 = vmatprep.subr.bf16.mxu0 %v405_v53 }
  0x2e   :  { %p378_p5 = por %p377_p4, %p376_p3 }
  0x2f   :  { %v72_v13 = vrot.slane %v61_v11, %v71_v8  ;;  %v76_v17 = vrot.slane %v68_v14, %v71_v8 }
  0x30   :  { %306 = vmatpush3.bf16.msra.mxu0 %v305_v56  ;;  %p379_p6 = pnand %p378_p5, %p372_p2 }
  0x31   :  { %v79_v16 = vmul.f32 %v72_v13, %v456_v12  ;;  %v80_v19 = vmul.f32 %v76_v17, %v458_v15 }
  0x33   :  { %v82_v18 = vsel %vm81_vm0, %v79_v16, 0.0  ;;  %v85_v20 = vsel %vm81_vm0, %v80_v19, 0.0 }
  0x34   :  { %83 = vadd.xlane.f32.xlu0 %v82_v18 }
  0x38   :  { %86 = vadd.xlane.f32.xlu0 %v85_v20 }
  0xc1   :  { %v84_v21 = vpop.xlane.xlu0 %83 }
  0xc2   :  { %v95_v23 = vrot.slane %v84_v21, %v94_v6 }
  0xc5   :  { %v87_v22 = vpop.xlane.xlu0 %86 }
  0xc6   :  { %v99_v24 = vrot.slane %v87_v22, %v94_v6 }
  0xc8   :  { %v101_v25 = vsel %vm100_vm1, %v99_v24, %v95_v23 }
  0xc9   :  { %v104_v26 = vsel %vm103_vm2, %v101_v25, -inf }
  0xca   :  { %105 = vmax.xlane.f32.xlu1 %v104_v26 }
 0x157   :  { %v106_v29 = vpop.xlane.xlu1 %105 }
 0x158   :  { %v111_v30 = vrot.slane %v106_v29, %v71_v8  ;;  %v115_v31 = vrot.slane %v106_v29, %v114_v28 }
 0x15a   :  { %v118_v32 = vsub.f32 %v84_v21, %v111_v30  ;;  %v119_v33 = vsub.f32 %v87_v22, %v115_v31 }
 0x15c   :  { %v120_v34 = vmul.f32 1.442695, %v118_v32  ;;  %v122_v35 = vmul.f32 1.442695, %v119_v33 }
 0x15e   :  { %319 = vpow2.f32 %v120_v34 }
 0x15f   :  { %321 = vpow2.f32 %v122_v35 }
 0x168   :  { %v320_v36 = vpop.eup %319 }
 0x169   :  { %v322_v37 = vpop.eup %321  ;;  %127 = vperm.xlu1 %317, %v320_v36  }
 0x16a   :  { %130 = vperm.xlu0 %318, %v322_v37  }
 0x1e8   :  { %v128_v38 = vpop.permute.xlu1 %127 }
 0x1e9   :  { %v131_v39 = vpop.permute.xlu0 %130  ;;  %v135_v40 = vrot.slane %v128_v38, %v94_v6 }
 0x1ea   :  { %v139_v41 = vrot.slane %v131_v39, %v94_v6 }
 0x1ec   :  { %v140_v42 = vsel %vm100_vm1, %v139_v41, %v135_v40 }
 0x1ed   :  { %v142_v43 = vsel %vm103_vm2, %v140_v42, 0.0 }
 0x1ee   :  { %143 = vadd.xlane.f32.xlu1 %v142_v43 }
 0x27b   :  { %v144_v44 = vpop.xlane.xlu1 %143 }
 0x27c   :  { %323 = vrcp.f32 %v144_v44 }
 0x286   :  { %v324_v45 = vpop.eup %323 }
 0x287   :  { %v150_v46 = vrot.slane %v324_v45, %v71_v8  ;;  %v154_v48 = vrot.slane %v324_v45, %v114_v28 }
 0x289   :  { %v157_v47 = vmul.f32 %v320_v36, %v150_v46  ;;  %v158_v49 = vmul.f32 %v322_v37, %v154_v48 }
 0x28b   :  { %161 = vperm.xlu0 %318, %v157_v47  }
 0x28f   :  { %166 = vperm.xlu0 %318, %v158_v49  }
 0x30a   :  { %v162_v58 = vpop.permute.xlu0 %161 }
 0x30b   :  { %v169_v59 = vmul.f32 %v162_v58, %v456_v12 }
 0x30d   :  { %v171_v60 = vsel %vm81_vm0, %v169_v59, 0.0 }
 0x30e   :  { %v172_v61 = vrot.slane %v171_v60, 4  ;;  %v167_v62 = vpop.permute.xlu0 %166 }
 0x30f   :  { %v170_v63 = vmul.f32 %v167_v62, %v458_v15 }
 0x310   :  { %v173_v0 = vadd.f32 %v172_v61, %v171_v60 }
 0x311   :  { %v178_v1 = vsel %vm81_vm0, %v170_v63, 0.0 }
 0x312   :  { %v174_v2 = vrot.slane %v173_v0, 2  ;;  %v179_v3 = vrot.slane %v178_v1, 4 }
 0x314   :  { %v175_v4 = vadd.f32 %v174_v2, %v173_v0  ;;  %v180_v5 = vadd.f32 %v179_v3, %v178_v1 }
 0x316   :  { %v181_v6 = vrot.slane %v180_v5, 2  ;;  %v176_v7 = vrot.slane %v175_v4, 1 }
 0x318   :  { %v182_v8 = vadd.f32 %v181_v6, %v180_v5  ;;  %v177_v10 = vadd.f32 %v176_v7, %v175_v4 }
 0x31a   :  { %v183_v9 = vrot.slane %v182_v8, 1 }
 0x31c   :  { %v184_v11 = vadd.f32 %v183_v9, %v182_v8 }
 0x31e   :  { %v191_v12 = vsel %vm100_vm1, %v184_v11, %v177_v10 }
 0x31f   :  { %299 = vmatmul.mubr.msk.f32.vlgmr.msra.gmra.mrb[0].mxu0 %vm81_vm0, %v191_v12 }
 0x3f2   :  { %v260_v13 = vpop.f32.mrb[0].mxu0 }
 0x3f3   :  { %325 = vtanh.f32 %v260_v13  ;;  %v300_v14 = vpop.f32.mrb[1].mxu0 }
 0x3fd   :  { %v326_v15 = vpop.eup %325 }
 0x3fe   :  { %266 = vst.msk [vmem:[#allocation7] sm:$0x3] %vm265_vm4, %v326_v15 }
 0x3ff   :  { %382 = shalt.err (!%p379_p6)
}
 0x400   :  { %s383_s15 = scalar_lea.hbm %s489_s3, 32 }
 0x401   :  { %p384_p7 = scmp.ne.s32.totalorder %s489_s3, %s383_s15  ;;  %p387_p8 = scmp.lt.u32.totalorder %s383_s15, %s489_s3 }
 0x403   :  { %p389_p9 = pnand %p387_p8, %p384_p7 }
 0x405   :  { %392 = shalt.err (!%p389_p9)
}
 0x406   :  { %276 = dma.vmem_to_hbm [thread:$0]  %s274_s2, 32, %s489_s3, [#allocation4]  }
 0x407   :  { %397 = dma.done.wait [#allocation4], 32  }
 0x408   :  { %398 = vsyncadd [#allocation4], 4294967264 }
 0x409   :  { %280 = vsyncpa [#allocation3], 1 }
 0x40a   :  { %281 = vsyncpa [#allocation6], 1 }
 0x40b   :  { %282 = vsyncpa [#allocation4], 1 }

</bundles_post_ra>
